<compile_context>
chip_gen: v7x
topology: tpu7x:2x2x1
jax: 0.10.0
libtpu: 0.0.40
codegen_flags: <defaults>
</compile_context>

<pallas_src>
import functools
import math

import jax
import jax.numpy as jnp
from jax.experimental import pallas as pl
from jax.experimental.pallas import tpu as pltpu


def _round_up(x, m):
    return (x + m - 1) // m * m


def fcnet_kernel(x_ref, w_ref, b_ref, o_ref, *, valid_features):
    # fc1: (TILE_N, 784) bf16 @ (784, 128) bf16 -> f32 accumulation on the MXU.
    y = jnp.dot(x_ref[...], w_ref[...], preferred_element_type=jnp.float32)
    y = y + b_ref[...]                      # (1, 128) f32 bias, lane broadcast

    # ReLU (second ReLU of the reference is a no-op and is omitted).
    y = jnp.maximum(y, 0.0)

    # dropout1 (p=0.5): identity under eval semantics.
    # TODO(synk): training-mode dropout (random mask + 1/(1-p) scale) not applied.

    # Exclude the zero-padded lanes (columns >= 20) from the softmax normalizer.
    col = jax.lax.broadcasted_iota(jnp.int32, y.shape, dimension=1)
    y = jnp.where(col < valid_features, y, jnp.float32(-1e30))

    # Numerically stable log_softmax over the feature dim, all in f32.
    m = jnp.max(y, axis=-1, keepdims=True)
    s = y - m
    lse = jnp.log(jnp.sum(jnp.exp(s), axis=-1, keepdims=True))
    o_ref[...] = (s - lse).astype(o_ref.dtype)


def fcnet_forward(x_nchw, w1, b1, *, tile_n=1024):
    """x_nchw: (N, 1, 28, 28) float32 -> (N, 20) float32 log-probabilities."""
    n = x_nchw.shape[0]
    in_features = w1.shape[0]                      # 784
    out_features = w1.shape[1]                     # 20
    padded_f = _round_up(out_features, 128)        # 128 -> lane-dense output

    # Flatten exactly like torch.flatten(x, start_dim=1).
    x_flat = x_nchw.reshape(n, -1)

    # Batch tiling: tile must be a multiple of 8; pad N up to a tile multiple.
    tile_n = min(tile_n, _round_up(n, 8))
    n_pad = _round_up(n, tile_n)
    if n_pad != n:
        x_flat = jnp.pad(x_flat, ((0, n_pad - n), (0, 0)))

    # Zero-pad the feature dim of the weights/bias to 128 lanes.
    w1_p = jnp.pad(w1, ((0, 0), (0, padded_f - out_features)))
    b1_p = jnp.pad(b1.reshape(1, -1), ((0, 0), (0, padded_f - out_features)))

    # bf16 streaming inputs (halves HBM bytes for x); f32 bias + f32 epilogue.
    x_bf = x_flat.astype(jnp.bfloat16)
    w_bf = w1_p.astype(jnp.bfloat16)
    b_f32 = b1_p.astype(jnp.float32)

    grid = (n_pad // tile_n,)

    cost = pl.CostEstimate(
        flops=2 * n_pad * in_features * padded_f,
        transcendentals=n_pad * padded_f,
        bytes_accessed=(n_pad * in_features * 2          # x (bf16)
                        + in_features * padded_f * 2     # w1 (bf16, once)
                        + padded_f * 4                   # b1
                        + n_pad * padded_f * 4),         # output (f32)
    )

    out_padded = pl.pallas_call(
        functools.partial(fcnet_kernel, valid_features=out_features),
        out_shape=jax.ShapeDtypeStruct((n_pad, padded_f), jnp.float32),
        grid=grid,
        in_specs=[
            # x: streamed per batch tile (double-buffered by Pallas).
            pl.BlockSpec((tile_n, in_features), lambda i: (i, 0)),
            # w1/b1: constant block index -> DMA'd once, kept resident in VMEM.
            pl.BlockSpec((in_features, padded_f), lambda i: (0, 0)),
            pl.BlockSpec((1, padded_f), lambda i: (0, 0)),
        ],
        out_specs=pl.BlockSpec((tile_n, padded_f), lambda i: (i, 0)),
        compiler_params=pltpu.CompilerParams(
            dimension_semantics=("parallel",),
        ),
        cost_estimate=cost,
    )(x_bf, w_bf, b_f32)

    # Drop batch padding and the lane padding.
    return out_padded[:n, :out_features]


def fcnet_reference(x_nchw, w1, b1):
    """Pure-JAX f32 reference mirroring the PyTorch eval forward."""
    x = x_nchw.reshape(x_nchw.shape[0], -1)
    y = x @ w1 + b1
    y = jnp.maximum(y, 0.0)
    return jax.nn.log_softmax(y, axis=-1)


def init_params(key):
    """Deterministic init mirroring torch.nn.Linear default (uniform ±1/sqrt(fan_in))."""
    k_w, k_b = jax.random.split(key)
    bound = 1.0 / math.sqrt(784.0)
    w1 = jax.random.uniform(k_w, (784, 20), jnp.float32, minval=-bound, maxval=bound)
    b1 = jax.random.uniform(k_b, (20,), jnp.float32, minval=-bound, maxval=bound)
    return w1, b1


if __name__ == "__main__":
    key = jax.random.PRNGKey(0)
    k_x, k_p = jax.random.split(key)

    # Small batch, MNIST-shaped input consistent with in_features=784.
    x = jax.random.normal(k_x, (2, 1, 28, 28), jnp.float32)
    w1, b1 = init_params(k_p)

    out = fcnet_forward(x, w1, b1)
    out = jax.block_until_ready(out)

    assert out.shape == (2, 20)

    # Sanity 1: log_softmax rows must sum (in prob space) to ~1.
    row_sums = jnp.sum(jnp.exp(out), axis=1)
    assert bool(jnp.all(jnp.abs(row_sums - 1.0) < 1e-4))

    # Sanity 2: matches f32 reference within bf16 streaming tolerance.
    ref = fcnet_reference(x, w1, b1)
    assert bool(jnp.all(jnp.abs(out - ref) < 5e-2))

    print("KERNEL_OK")
</pallas_src>

<mosaic_0001>
module attributes {stable_mosaic.version = 11 : i64} {
  func.func @fcnet_kernel(%arg0: i32, %arg1: memref<8x784xbf16, #tpu.memory_space<vmem>>, %arg2: memref<784x128xbf16, #tpu.memory_space<vmem>>, %arg3: memref<1x128xf32, #tpu.memory_space<vmem>>, %arg4: memref<8x128xf32, #tpu.memory_space<vmem>>) attributes {dimension_semantics = [#tpu.dimension_semantics<parallel>], iteration_bounds = array<i64: 1>, scalar_prefetch = 0 : i64, scratch_operands = 0 : i64, tpu.core_type = #tpu.core_type<tc>, window_params = [{transform_indices = @transform_0, window_bounds = array<i64: 8, 784>}, {pipeline_mode = #tpu.pipeline_mode<synchronous>, transform_indices = @transform_1, window_bounds = array<i64: 784, 128>}, {pipeline_mode = #tpu.pipeline_mode<synchronous>, transform_indices = @transform_2, window_bounds = array<i64: 1, 128>}, {transform_indices = @transform_3, window_bounds = array<i64: 8, 128>}]} {
    %c0 = arith.constant 0 : index
    %c0_0 = arith.constant 0 : index
    %0 = vector.load %arg1[%c0, %c0_0] : memref<8x784xbf16, #tpu.memory_space<vmem>>, vector<8x784xbf16>
    %c0_1 = arith.constant 0 : index
    %c0_2 = arith.constant 0 : index
    %1 = vector.load %arg2[%c0_1, %c0_2] : memref<784x128xbf16, #tpu.memory_space<vmem>>, vector<784x128xbf16>
    %cst = arith.constant dense<0.000000e+00> : vector<8x128xf32>
    %2 = tpu.matmul %0, %1, %cst {dimension_numbers = #tpu.dot_dimension_numbers<[1], [0], [0], [1], [0, 0, 1, 1], [], []>} : vector<8x784xbf16>, vector<784x128xbf16>, vector<8x128xf32> -> vector<8x128xf32>
    %c0_3 = arith.constant 0 : index
    %c0_4 = arith.constant 0 : index
    %3 = vector.load %arg3[%c0_3, %c0_4] : memref<1x128xf32, #tpu.memory_space<vmem>>, vector<1x128xf32>
    %4 = vector.broadcast %3 : vector<1x128xf32> to vector<8x128xf32>
    %5 = arith.addf %2, %4 : vector<8x128xf32>
    %cst_5 = arith.constant 0.000000e+00 : f32
    %6 = vector.broadcast %cst_5 : f32 to vector<8x128xf32>
    %7 = arith.maximumf %5, %6 : vector<8x128xf32>
    %8 = tpu.iota {dimensions = array<i32: 1>} : vector<8x128xi32>
    %c20_i32 = arith.constant 20 : i32
    %9 = vector.broadcast %c20_i32 : i32 to vector<8x128xi32>
    %10 = arith.cmpi slt, %8, %9 : vector<8x128xi32>
    %cst_6 = arith.constant -1.000000e+30 : f32
    %11 = vector.broadcast %cst_6 : f32 to vector<8x128xf32>
    %12 = arith.select %10, %7, %11 : vector<8x128xi1>, vector<8x128xf32>
    %cst_7 = arith.constant dense<0xFF800000> : vector<8xf32>
    %13 = vector.multi_reduction <maximumf>, %12, %cst_7 [1] : vector<8x128xf32> to vector<8xf32>
    %14 = vector.shape_cast %13 : vector<8xf32> to vector<8x1xf32>
    %15 = vector.broadcast %14 : vector<8x1xf32> to vector<8x128xf32>
    %16 = arith.subf %12, %15 : vector<8x128xf32>
    %17 = math.exp %16 : vector<8x128xf32>
    %cst_8 = arith.constant dense<0.000000e+00> : vector<8xf32>
    %18 = vector.multi_reduction <add>, %17, %cst_8 [1] : vector<8x128xf32> to vector<8xf32>
    %19 = vector.shape_cast %18 : vector<8xf32> to vector<8x1xf32>
    %20 = math.log %19 : vector<8x1xf32>
    %21 = vector.broadcast %20 : vector<8x1xf32> to vector<8x128xf32>
    %22 = arith.subf %16, %21 : vector<8x128xf32>
    %c0_9 = arith.constant 0 : index
    %c0_10 = arith.constant 0 : index
    %23 = vector.load %arg4[%c0_9, %c0_10] : memref<8x128xf32, #tpu.memory_space<vmem>>, vector<8x128xf32>
    tpu.vector_store %arg4[%c0_9, %c0_10], %22 {strides = array<i32>} : memref<8x128xf32, #tpu.memory_space<vmem>>, vector<8x128xf32>,
    return
  }
  func.func @transform_0(%arg0: i32) -> (i32, i32) {
    %c0_i32 = arith.constant 0 : i32
    %c0_i32_0 = arith.constant 0 : i32
    return %arg0, %c0_i32 : i32, i32
  }
  func.func @transform_1(%arg0: i32) -> (i32, i32) {
    %c0_i32 = arith.constant 0 : i32
    %c0_i32_0 = arith.constant 0 : i32
    %c0_i32_1 = arith.constant 0 : i32
    return %c0_i32, %c0_i32_0 : i32, i32
  }
  func.func @transform_2(%arg0: i32) -> (i32, i32) {
    %c0_i32 = arith.constant 0 : i32
    %c0_i32_0 = arith.constant 0 : i32
    %c0_i32_1 = arith.constant 0 : i32
    return %c0_i32, %c0_i32_0 : i32, i32
  }
  func.func @transform_3(%arg0: i32) -> (i32, i32) {
    %c0_i32 = arith.constant 0 : i32
    %c0_i32_0 = arith.constant 0 : i32
    return %arg0, %c0_i32 : i32, i32
  }
}

</mosaic_0001>

<bundles_post_ra>
// kernel: tpu_custom_call.1
= control target key start
LH: loop header
LB: loop body
LE: loop exit
PB: predicated region body
PF: predicated region fallthrough
CT: control target
= control target key end

     0   :  { %8 = vsyncpa [#allocation3], 0  ;;  %s1009_s0 = inlined_call_operand.hbm [shape: bf16[8,784], index: 0, kind: input, shape index: {}]   ;;  %s1010_s1 = inlined_call_operand.hbm [shape: bf16[784,128], index: 1, kind: input, shape index: {}]   ;;  %s1011_s2 = inlined_call_operand.vmem [shape: f32[1,128], index: 2, kind: input, shape index: {}]   ;;  %s1012_s3 = inlined_call_operand.hbm [shape: f32[8,128], index: 3, kind: output, shape index: {}]  }
   0x1   :  { %9 = vsyncpa [#allocation6], 0 }
   0x2   :  { %10 = vsyncpa [#allocation4], 0  ;;  %s936_s12 = smov [#allocation2]   ;;  %s937_s14 = smov [#allocation5]  }
   0x3   :  { %s17_s13 = sshll.u32 %s936_s12, 4  ;;  %s26_s15 = sshll.u32 %s937_s14, 4  ;;  %s18_s13 = int_to_ptr.vmem [resolvable:$true] %s17_s13  ;;  %s963_s15 = int_to_ptr.vmem [resolvable:$true] %s26_s15 }
   0x4   :  { %s864_s18 = scalar_lea.hbm %s1009_s0, 448 }
   0x5   :  { %p865_p0 = scmp.ne.s32.totalorder %s1009_s0, %s864_s18  ;;  %p868_p1 = scmp.lt.u32.totalorder %s864_s18, %s1009_s0 }
   0x7   :  { %p870_p2 = pnand %p868_p1, %p865_p0 }
   0x9   :  { %873 = shalt.err (!%p870_p2)
}
   0xa   :  { %s874_s23 = scalar_lea.vmem %s18_s13, 448  ;;  %p879_p4 = scmp.lt.s32.totalorder %s18_s13, %s18_s13 }
   0xb   :  { %p875_p3 = scmp.ne.s32.totalorder %s18_s13, %s874_s23  ;;  %p880_p5 = scmp.lt.s32.totalorder %s874_s23, %s874_s23 }
   0xd   :  { %p881_p6 = por %p880_p5, %p879_p4 }
   0xf   :  { %p882_p7 = pnand %p881_p6, %p875_p3 }
  0x11   :  { %885 = shalt.err (!%p882_p7)
}
  0x12   :  { %20 = dma.hbm_to_vmem [thread:$0]  %s1009_s0, 448, %s18_s13, [#allocation3]  }
  0x13   :  { %s886_s28 = scalar_lea.hbm %s1010_s1, 6272 }
  0x14   :  { %p887_p8 = scmp.ne.s32.totalorder %s1010_s1, %s886_s28  ;;  %p890_p9 = scmp.lt.u32.totalorder %s886_s28, %s1010_s1 }
  0x16   :  { %p892_p10 = pnand %p890_p9, %p887_p8 }
  0x18   :  { %895 = shalt.err (!%p892_p10)
}
  0x19   :  { %s896_s6 = scalar_lea.vmem %s963_s15, 6272  ;;  %p901_p12 = scmp.lt.s32.totalorder %s963_s15, %s963_s15 }
  0x1a   :  { %p897_p11 = scmp.ne.s32.totalorder %s963_s15, %s896_s6  ;;  %p902_p13 = scmp.lt.s32.totalorder %s896_s6, %s896_s6 }
  0x1c   :  { %p903_p0 = por %p902_p13, %p901_p12 }
  0x1e   :  { %p904_p1 = pnand %p903_p0, %p897_p11 }
  0x20   :  { %907 = shalt.err (!%p904_p1)
}
  0x21   :  { %s938_s0 = smov 64   ;;  %s939_s7 = smov 4  }
  0x22   :  { %32 = dma.hbm_to_vmem [thread:$0]  %s1010_s1, 6272, %s963_s15, [#allocation6], %s938_s0, %s938_s0, %s939_s7  }
  0x23   :  { %930 = dma.done.wait [#allocation3], 448  }
  0x24   :  { %931 = vsyncadd [#allocation3], 4294966848 }
  0x25   :  { %932 = dma.done.wait [#allocation6], 6272  }
  0x26   :  { %933 = vsyncadd [#allocation6], 4294961024  ;;  %v804_v0 = vld [vmem:[#allocation5 + $0x40] sm:$0xff]   ;;  %v808_v4 = vld [vmem:[#allocation5 + $0x48] sm:$0xff]   ;;  %v940_v43 = vmov 0.0   ;;  %vm941_vm0 = vmmov 0  }
  0x27   :  { %v805_v1 = vld [vmem:[#allocation5] sm:$0xff]   ;;  %723 = vmatprep.subr.bf16.mxu0 %v804_v0  ;;  %v809_v5 = vld [vmem:[#allocation5 + $0x8] sm:$0xff]   ;;  %v812_v8 = vld [vmem:[#allocation5 + $0x50] sm:$0xff]   ;;  %vm469_vm1 = vcmask 130048  }
  0x28   :  { %v806_v2 = vld [vmem:[#allocation5 + $0xc0] sm:$0xff]   ;;  %724 = vmatpush3.bf16.msra.mxu0 %v805_v1  ;;  %v810_v6 = vld [vmem:[#allocation5 + $0xc8] sm:$0xff]   ;;  %v813_v9 = vld [vmem:[#allocation5 + $0x10] sm:$0xff]  }
  0x29   :  { %v807_v3 = vld [vmem:[#allocation5 + $0x80] sm:$0xff]   ;;  %745 = vmatprep.subr.bf16.mxu1 %v806_v2  ;;  %725 = vmatprep.subr.bf16.mxu0 %v808_v4  ;;  %v811_v7 = vld [vmem:[#allocation5 + $0x88] sm:$0xff]   ;;  %v814_v10 = vld [vmem:[#allocation5 + $0xd0] sm:$0xff]  }
  0x2a   :  { %746 = vmatpush3.bf16.msra.mxu1 %v807_v3  ;;  %v815_v11 = vld [vmem:[#allocation5 + $0x90] sm:$0xff]   ;;  %v816_v12 = vld [vmem:[#allocation5 + $0x58] sm:$0xff]   ;;  %v820_v16 = vld [vmem:[#allocation5 + $0x60] sm:$0xff]  }
  0x2b   :  { %747 = vmatprep.subr.bf16.mxu1 %v810_v6  ;;  %v817_v13 = vld [vmem:[#allocation5 + $0x18] sm:$0xff]   ;;  %v821_v17 = vld [vmem:[#allocation5 + $0x20] sm:$0xff]   ;;  %v824_v20 = vld [vmem:[#allocation5 + $0x68] sm:$0xff]  }
  0x2c   :  { %726 = vmatpush3.bf16.msra.mxu0 %v809_v5  ;;  %v818_v14 = vld [vmem:[#allocation5 + $0xd8] sm:$0xff]   ;;  %v822_v18 = vld [vmem:[#allocation5 + $0xe0] sm:$0xff]   ;;  %v825_v21 = vld [vmem:[#allocation5 + $0x28] sm:$0xff]  }
  0x2d   :  { %727 = vmatprep.subr.bf16.mxu0 %v812_v8  ;;  %v819_v15 = vld [vmem:[#allocation5 + $0x98] sm:$0xff]   ;;  %v823_v19 = vld [vmem:[#allocation5 + $0xa0] sm:$0xff]   ;;  %v826_v22 = vld [vmem:[#allocation5 + $0xe8] sm:$0xff]  }
  0x2e   :  { %748 = vmatpush3.bf16.msra.mxu1 %v811_v7  ;;  %v827_v23 = vld [vmem:[#allocation5 + $0xa8] sm:$0xff]   ;;  %v828_v24 = vld [vmem:[#allocation5 + $0x70] sm:$0xff]   ;;  %v832_v28 = vld [vmem:[#allocation5 + $0x78] sm:$0xff]  }
  0x2f   :  { %749 = vmatprep.subr.bf16.mxu1 %v814_v10  ;;  %v829_v25 = vld [vmem:[#allocation5 + $0x30] sm:$0xff]   ;;  %v833_v29 = vld [vmem:[#allocation5 + $0x38] sm:$0xff]   ;;  %v42_v31 = vld [vmem:[#allocation2] sm:$0xff] }
  0x30   :  { %728 = vmatpush3.bf16.msra.mxu0 %v813_v9  ;;  %v830_v26 = vld [vmem:[#allocation5 + $0xf0] sm:$0xff]   ;;  %v834_v30 = vld [vmem:[#allocation5 + $0xf8] sm:$0xff]   ;;  %v666_v32 = vcombine.low %v42_v31, %v42_v31  ;;  %v667_v33 = vcombine.high %v42_v31, %v42_v31  ;;  %v838_v35 = vld [vmem:[#allocation5 + $0x140] sm:$0xff]  }
  0x31   :  { %729 = vmatprep.subr.bf16.mxu0 %v816_v12  ;;  %v831_v27 = vld [vmem:[#allocation5 + $0xb0] sm:$0xff]   ;;  %v837_v34 = vld [vmem:[#allocation5 + $0xb8] sm:$0xff]   ;;  %v841_v39 = vld [vmem:[#allocation5 + $0x100] sm:$0xff]  }
  0x32   :  { %750 = vmatpush3.bf16.msra.mxu1 %v815_v11  ;;  %v43_v36 = vld [vmem:[#allocation2 + $0x8] sm:$0xff]  ;;  %505 = vmatprep.mubr.bf16.mxu0 %v667_v33  ;;  %v846_v45 = vld [vmem:[#allocation5 + $0x158] sm:$0xff]   ;;  %v848_v47 = vld [vmem:[#allocation5 + $0x160] sm:$0xff]  }
  0x33   :  { %751 = vmatprep.subr.bf16.mxu1 %v818_v14  ;;  %v668_v37 = vcombine.low %v43_v36, %v43_v36  ;;  %v669_v38 = vcombine.high %v43_v36, %v43_v36  ;;  %v842_v40 = vld [vmem:[#allocation5 + $0x148] sm:$0xff]   ;;  %v844_v42 = vld [vmem:[#allocation5 + $0x150] sm:$0xff]   ;;  %v847_v46 = vld [vmem:[#allocation5 + $0x118] sm:$0xff]  }
  0x34   :  { %730 = vmatpush3.bf16.msra.mxu0 %v817_v13  ;;  %v843_v41 = vld [vmem:[#allocation5 + $0x108] sm:$0xff]   ;;  %v845_v44 = vld [vmem:[#allocation5 + $0x110] sm:$0xff]   ;;  %v849_v48 = vld [vmem:[#allocation5 + $0x120] sm:$0xff]   ;;  %v634_v13 = vlaneseq }
  0x35   :  { %731 = vmatprep.subr.bf16.mxu0 %v820_v16  ;;  %545 = vmatprep.mubr.bf16.mxu1 %v669_v38  ;;  %v850_v49 = vld [vmem:[#allocation5 + $0x168] sm:$0xff]   ;;  %v856_v50 = vld [vmem:[#allocation5 + $0x180] sm:$0xff]   ;;  %v44_v51 = vld [vmem:[#allocation2 + $0x10] sm:$0xff] }
  0x36   :  { %752 = vmatpush3.bf16.msra.mxu1 %v819_v15  ;;  %v671_v52 = vcombine.high %v44_v51, %v44_v51  ;;  %v859_v53 = vld [vmem:[#allocation2 + $0x18] ss:$0 sps:$4 sm:$0xff]   ;;  %v851_v54 = vld [vmem:[#allocation5 + $0x128] sm:$0xff]   ;;  %v852_v55 = vld [vmem:[#allocation5 + $0x170] sm:$0xff]   ;;  %v670_v59 = vcombine.low %v44_v51, %v44_v51 }
  0x37   :  { %753 = vmatprep.subr.bf16.mxu1 %v822_v18  ;;  %v853_v56 = vld [vmem:[#allocation5 + $0x130] sm:$0xff]   ;;  %v854_v57 = vld [vmem:[#allocation5 + $0x178] sm:$0xff]   ;;  %v665_v61 = vld [vmem:[%s1011_s2] ss:$0 sm:$0xff]  ;;  %s942_s2 = smov [#allocation7]  }
  0x38   :  { %732 = vmatpush3.bf16.msra.mxu0 %v821_v17  ;;  %v855_v58 = vld [vmem:[#allocation5 + $0x138] sm:$0xff]   ;;  %s655_s11 = sshll.u32 %s942_s2, 4  ;;  %s656_s11 = int_to_ptr.vmem [resolvable:$true] %s655_s11 }
  0x39   :  { %733 = vmatprep.subr.bf16.mxu0 %v824_v20  ;;  %s908_s12 = scalar_lea.vmem %s656_s11, 128  ;;  %p913_p3 = scmp.lt.s32.totalorder %s656_s11, %s656_s11 }
  0x3a   :  { %754 = vmatpush3.bf16.msra.mxu1 %v823_v19  ;;  %v635_v19 = vand.u32 127, %v634_v13  ;;  %p909_p2 = scmp.ne.s32.totalorder %s656_s11, %s908_s12  ;;  %p914_p4 = scmp.lt.s32.totalorder %s908_s12, %s908_s12 }
  0x3b   :  { %755 = vmatprep.subr.bf16.mxu1 %v826_v22 }
  0x3c   :  { %734 = vmatpush3.bf16.msra.mxu0 %v825_v21  ;;  %vm636_vm2 = vcmp.lt.s32.totalorder %v635_v19, 20  ;;  %p915_p5 = por %p914_p4, %p913_p3 }
  0x3d   :  { %735 = vmatprep.subr.bf16.mxu0 %v828_v24 }
  0x3e   :  { %756 = vmatpush3.bf16.msra.mxu1 %v827_v23  ;;  %p916_p6 = pnand %p915_p5, %p909_p2 }
  0x3f   :  { %757 = vmatprep.subr.bf16.mxu1 %v830_v26 }
  0x40   :  { %736 = vmatpush3.bf16.msra.mxu0 %v829_v25 }
  0x41   :  { %737 = vmatprep.subr.bf16.mxu0 %v832_v28 }
  0x42   :  { %758 = vmatpush3.bf16.msra.mxu1 %v831_v27 }
  0x43   :  { %759 = vmatprep.subr.bf16.mxu1 %v834_v30 }
  0x44   :  { %738 = vmatpush3.bf16.msra.mxu0 %v833_v29 }
  0x45   :  { %767 = vmatprep.subr.bf16.mxu0 %v838_v35 }
  0x46   :  { %760 = vmatpush3.bf16.msra.mxu1 %v837_v34 }
  0x47   :  { %506 = vmatmul.mubr.bf16.vlgmr.msra.gmra.mrb[0].mxu0 %v666_v32  ;;  %791 = vmatprep.subr.bf16.mxu1 %v940_v43 }
  0x48   :  { %768 = vmatpush3.bf16.msra.mxu0 %v841_v39  ;;  %585 = vmatprep.mubr.bf16.mxu0 %v671_v52 }
  0x49   :  { %546 = vmatmul.mubr.bf16.vlgmr.msra.gmra.mrb[0].mxu1 %v668_v37  ;;  %769 = vmatprep.subr.bf16.mxu0 %v842_v40 }
  0x4a   :  { %793 = vmatprep.mubr.msk.bf16.mxu1 %vm941_vm0, %v940_v43  ;;  %792 = vmatpush3.bf16.msra.mxu1 %v856_v50 }
  0x4c   :  { %770 = vmatpush3.bf16.msra.mxu0 %v843_v41 }
  0x4d   :  { %771 = vmatprep.subr.bf16.mxu0 %v844_v42 }
  0x50   :  { %772 = vmatpush3.bf16.msra.mxu0 %v845_v44 }
  0x51   :  { %773 = vmatprep.subr.bf16.mxu0 %v846_v45  ;;  %794 = vmatmul.mubr.msk.bf16.vlgmr.msra.gmra.mrb[4].mxu1 %vm469_vm1, %v859_v53 }
  0x54   :  { %774 = vmatpush3.bf16.msra.mxu0 %v847_v46 }
  0x55   :  { %775 = vmatprep.subr.bf16.mxu0 %v848_v47 }
  0x58   :  { %776 = vmatpush3.bf16.msra.mxu0 %v849_v48 }
  0x59   :  { %777 = vmatprep.subr.bf16.mxu0 %v850_v49 }
  0x5c   :  { %778 = vmatpush3.bf16.msra.mxu0 %v851_v54 }
  0x5d   :  { %779 = vmatprep.subr.bf16.mxu0 %v852_v55 }
  0x60   :  { %780 = vmatpush3.bf16.msra.mxu0 %v853_v56 }
  0x61   :  { %781 = vmatprep.subr.bf16.mxu0 %v854_v57 }
  0x64   :  { %782 = vmatpush3.bf16.msra.mxu0 %v855_v58 }
  0x67   :  { %586 = vmatmul.mubr.bf16.vlgmr.msra.gmra.mrb[4].mxu0 %v670_v59 }
 0x11a   :  { %v739_v60 = vpop.f32.mrb[0].mxu0 }
 0x11b   :  { %v740_v62 = vpop.f32.mrb[1].mxu0 }
 0x11c   :  { %v741_v63 = vadd.f32 %v740_v62, %v739_v60  ;;  %v742_v0 = vpop.f32.mrb[2].mxu0  ;;  %v761_v1 = vpop.f32.mrb[0].mxu1 }
 0x11d   :  { %v743_v2 = vpop.f32.mrb[3].mxu0  ;;  %v762_v3 = vpop.f32.mrb[1].mxu1 }
 0x11e   :  { %v508_v4 = vadd.f32 %v741_v63, %v665_v61  ;;  %v763_v5 = vadd.f32 %v762_v3, %v761_v1  ;;  %v764_v6 = vpop.f32.mrb[2].mxu1 }
 0x11f   :  { %v765_v7 = vpop.f32.mrb[3].mxu1 }
 0x120   :  { %v548_v8 = vadd.f32 %v763_v5, %v508_v4 }
 0x124   :  { %v627_v9 = vpop.f32.mrb[4].mxu1 }
 0x125   :  { %v795_v10 = vpop.f32.mrb[5].mxu1 }
 0x126   :  { %v630_v11 = vpop.f32.mrb[6].mxu1 }
 0x127   :  { %v796_v12 = vpop.f32.mrb[7].mxu1 }
 0x13a   :  { %v783_v14 = vpop.f32.mrb[4].mxu0 }
 0x13b   :  { %v784_v15 = vpop.f32.mrb[5].mxu0 }
 0x13c   :  { %v785_v16 = vadd.f32 %v784_v15, %v783_v14  ;;  %v786_v17 = vpop.f32.mrb[6].mxu0 }
 0x13d   :  { %v787_v18 = vpop.f32.mrb[7].mxu0 }
 0x13e   :  { %v588_v20 = vadd.f32 %v785_v16, %v548_v8 }
 0x140   :  { %v628_v21 = vadd.f32 %v627_v9, %v588_v20 }
 0x142   :  { %v633_v22 = vmax.f32 %v628_v21, 0.0 }
 0x144   :  { %v637_v23 = vsel %vm636_vm2, %v633_v22, -1e+30 }
 0x145   :  { %638 = vmax.xlane.f32.xlu0 %v637_v23 }
 0x1d2   :  { %v639_v24 = vpop.xlane.xlu0 %638 }
 0x1d3   :  { %v640_v25 = vsub.f32 %v637_v23, %v639_v24 }
 0x1d5   :  { %v641_v26 = vmul.f32 1.442695, %v640_v25 }
 0x1d7   :  { %860 = vpow2.f32 %v641_v26 }
 0x1e1   :  { %v861_v27 = vpop.eup %860 }
 0x1e2   :  { %643 = vadd.xlane.f32.xlu0 %v861_v27 }
 0x26f   :  { %v644_v28 = vpop.xlane.xlu0 %643 }
 0x270   :  { %862 = vlog2.f32 %v644_v28 }
 0x27a   :  { %v863_v29 = vpop.eup %862 }
 0x27b   :  { %v646_v30 = vmul.f32 0.6931472, %v863_v29 }
 0x27d   :  { %v647_v31 = vsub.f32 %v640_v25, %v646_v30 }
 0x27f   :  { %648 = vst [vmem:[#allocation7] sm:$0xff] %v647_v31 }
 0x280   :  { %919 = shalt.err (!%p916_p6)
}
 0x281   :  { %s920_s15 = scalar_lea.hbm %s1012_s3, 128 }
 0x282   :  { %p921_p7 = scmp.ne.s32.totalorder %s1012_s3, %s920_s15  ;;  %p924_p8 = scmp.lt.u32.totalorder %s920_s15, %s1012_s3 }
 0x284   :  { %p926_p9 = pnand %p924_p8, %p921_p7 }
 0x286   :  { %929 = shalt.err (!%p926_p9)
}
 0x287   :  { %658 = dma.vmem_to_hbm [thread:$0]  %s656_s11, 128, %s1012_s3, [#allocation4]  }
 0x288   :  { %934 = dma.done.wait [#allocation4], 128  }
 0x289   :  { %935 = vsyncadd [#allocation4], 4294967168 }
 0x28a   :  { %662 = vsyncpa [#allocation3], 1 }
 0x28b   :  { %663 = vsyncpa [#allocation6], 1 }
 0x28c   :  { %664 = vsyncpa [#allocation4], 1 }

</bundles_post_ra>
